<compile_context>
chip_gen: v6e
topology: v6e:2x2x1
jax: 0.10.0
libtpu: 0.0.40
codegen_flags: <defaults>
</compile_context>

<pallas_src>
import functools

import jax
import jax.numpy as jnp
from jax.experimental import pallas as pl
from jax.experimental.pallas import tpu as pltpu


# ---------------------------------------------------------------------------
# Single fused kernel: LSTM recurrence + (Linear(2) -> Gumbel-softmax -> mask) epilogue.
# ---------------------------------------------------------------------------
def _generator_kernel(x_ref, noise_ref, wih_ref, whh_ref, bias_ref,
                      wdiff_ref, bdiff_ref, mask_ref, *,
                      inv_temperature, threshold, training):
    B, T, E = x_ref.shape
    H = whh_ref.shape[0]

    # ---- hoisted input projection: all timesteps in one MXU call ----
    x2d = x_ref[...].reshape(B * T, E)
    xw = jnp.dot(x2d, wih_ref[...], preferred_element_type=jnp.float32) + bias_ref[...]
    xw = xw.reshape(B, T, 4 * H)                                   # (B, T, 4H)

    whh = whh_ref[...]                                             # (H, 4H), VMEM resident
    # TODO(synk): hold W_hh in the MXU staging registers across the recurrence
    # (pltpu.matmul_push_rhs / matmul_acc_lhs / matmul_pop) to avoid re-streaming the RHS
    # every step; kept as jnp.dot for lowering robustness at these tiny, unaligned shapes.

    h = jnp.zeros((B, H), jnp.float32)
    c = jnp.zeros((B, H), jnp.float32)

    hs = []
    for t in range(T):  # static, fully unrolled time loop (T=8); use lax.fori_loop if T grows
        gates = xw[:, t, :]                                        # (B, 4H), order [i,f,o|g]
        if t > 0:
            gates = gates + jnp.dot(h, whh, preferred_element_type=jnp.float32)
        sg = jax.nn.sigmoid(gates[:, 0:3 * H])                     # contiguous [i | f | o]
        g_g = jnp.tanh(gates[:, 3 * H:4 * H])                      # [g]
        i_g = sg[:, 0 * H:1 * H]
        f_g = sg[:, 1 * H:2 * H]
        o_g = sg[:, 2 * H:3 * H]
        c = f_g * c + i_g * g_g
        h = o_g * jnp.tanh(c)
        hs.append(h)

    # ---- head epilogue, hoisted out of the time loop ----
    # Linear(H->2) folded to a weight-difference dot: softmax([z0, z1])[..., 1]
    # == sigmoid(z1 - z0).  1/temperature is already folded into wdiff / bdiff.
    h_all = jnp.stack(hs, axis=1).reshape(B * T, H)                # (B*T, H)
    logit = jnp.dot(h_all, wdiff_ref[...],
                    preferred_element_type=jnp.float32).reshape(B, T)

    # Gumbel noise reduced to the (class 1 - class 0) difference; matches the PyTorch
    # in-place chain -log(-log(u + 1e-9) + 1e-9) exactly (same edge behavior for u ~ 1).
    g = -jnp.log(-jnp.log(noise_ref[...] + 1e-9) + 1e-9)           # (B, T, 2)
    gdiff = (g[:, :, 1] - g[:, :, 0]) * inv_temperature            # (B, T)

    probs = jax.nn.sigmoid(logit + bdiff_ref[0] + gdiff)           # (B, T), single store below
    if training:
        mask_ref[...] = probs
    else:
        mask_ref[...] = (probs > threshold).astype(jnp.float32)


def _reorder_gates_ifog(w):
    """PyTorch LSTM gate order [i, f, g, o] along axis 0 -> [i, f, o, g]."""
    H = w.shape[0] // 4
    return jnp.concatenate([w[0:2 * H], w[3 * H:4 * H], w[2 * H:3 * H]], axis=0)


def generator_forward(x_bte, params, noise_bt2, *, temperature, threshold, training=True):
    """x_bte: (B, T, E) batch-first (PyTorch convention). Returns mask (B, T) float32."""
    B, T, E = x_bte.shape
    H4 = params["w_ih"].shape[0]
    H = H4 // 4

    # One-time parameter prep: gate reorder, transposes, temperature folding.
    wih_t = jnp.transpose(_reorder_gates_ifog(params["w_ih"]))      # (E, 4H), [i,f,o,g]
    whh_t = jnp.transpose(_reorder_gates_ifog(params["w_hh"]))      # (H, 4H), [i,f,o,g]
    bias = _reorder_gates_ifog(params["b_ih"] + params["b_hh"]).reshape(1, H4)
    inv_temp = 1.0 / float(temperature)
    w_diff = ((params["w_out"][1] - params["w_out"][0]) * inv_temp).reshape(H, 1)
    b_diff = ((params["b_out"][1] - params["b_out"][0]) * inv_temp).reshape(1)

    kernel = functools.partial(
        _generator_kernel,
        inv_temperature=inv_temp,
        threshold=float(threshold),
        training=bool(training),
    )

    # TODO(synk): when scaling B*T, set pltpu.CompilerParams(vmem_limit_bytes=...) and
    # switch to a T-chunked grid carrying (h, c) in scratch; unnecessary at this size.
    return pl.pallas_call(
        kernel,
        out_shape=jax.ShapeDtypeStruct((B, T), jnp.float32),
        in_specs=[
            pl.BlockSpec(memory_space=pltpu.MemorySpace.VMEM),  # x       (B, T, E)
            pl.BlockSpec(memory_space=pltpu.MemorySpace.VMEM),  # noise   (B, T, 2)
            pl.BlockSpec(memory_space=pltpu.MemorySpace.VMEM),  # W_ih^T  (E, 4H)  [i,f,o,g]
            pl.BlockSpec(memory_space=pltpu.MemorySpace.VMEM),  # W_hh^T  (H, 4H)  [i,f,o,g]
            pl.BlockSpec(memory_space=pltpu.MemorySpace.VMEM),  # bias    (1, 4H)  [i,f,o,g]
            pl.BlockSpec(memory_space=pltpu.MemorySpace.VMEM),  # w_diff  (H, 1)   * 1/temp
            pl.BlockSpec(memory_space=pltpu.MemorySpace.SMEM),  # b_diff  (1,)     * 1/temp
        ],
        out_specs=pl.BlockSpec(memory_space=pltpu.MemorySpace.VMEM),
    )(x_bte, noise_bt2, wih_t, whh_t, bias, w_diff, b_diff)


# ---------------------------------------------------------------------------
# Pure-JAX reference (mirrors the PyTorch module) for a correctness check.
# ---------------------------------------------------------------------------
def generator_reference(x_bte, params, noise_bt2, *, temperature, threshold, training=True):
    B, T, E = x_bte.shape
    H = params["w_hh"].shape[1]
    w_ih, w_hh = params["w_ih"], params["w_hh"]
    b = params["b_ih"] + params["b_hh"]

    def step(carry, x_t):
        h, c = carry
        gates = x_t @ w_ih.T + h @ w_hh.T + b
        i = jax.nn.sigmoid(gates[:, 0 * H:1 * H])
        f = jax.nn.sigmoid(gates[:, 1 * H:2 * H])
        g = jnp.tanh(gates[:, 2 * H:3 * H])
        o = jax.nn.sigmoid(gates[:, 3 * H:4 * H])
        c = f * c + i * g
        h = o * jnp.tanh(c)
        return (h, c), h

    x_tbe = jnp.transpose(x_bte, (1, 0, 2))
    (_, _), hs = jax.lax.scan(
        step, (jnp.zeros((B, H), jnp.float32), jnp.zeros((B, H), jnp.float32)), x_tbe)
    hs = jnp.transpose(hs, (1, 0, 2))                              # (B, T, H)
    logits = hs @ params["w_out"].T + params["b_out"]              # (B, T, 2)
    gn = -jnp.log(-jnp.log(noise_bt2 + 1e-9) + 1e-9)
    probs = jax.nn.softmax((logits + gn) / temperature, axis=-1)[:, :, 1]
    if training:
        return probs
    return (probs > threshold).astype(jnp.float32)


if __name__ == "__main__":
    # args: embedding_size=32, hidden_size=32, gen_layers=1, gen_bidirectional=False,
    #       elmo=False, temperature=1.0, threshold=0.5, drop_out=1.0 (dropout=0, no-op)
    B, T, E, H = 2, 8, 32, 32
    temperature, threshold = 1.0, 0.5

    key = jax.random.PRNGKey(0)
    k_x, k_wih, k_whh, k_bih, k_bhh, k_wo, k_bo, k_noise = jax.random.split(key, 8)

    scale = float(1.0 / (H ** 0.5))
    params = {
        "w_ih": jax.random.uniform(k_wih, (4 * H, E), jnp.float32, -scale, scale),
        "w_hh": jax.random.uniform(k_whh, (4 * H, H), jnp.float32, -scale, scale),
        "b_ih": jax.random.uniform(k_bih, (4 * H,), jnp.float32, -scale, scale),
        "b_hh": jax.random.uniform(k_bhh, (4 * H,), jnp.float32, -scale, scale),
        "w_out": jax.random.uniform(k_wo, (2, H), jnp.float32, -scale, scale),
        "b_out": jax.random.uniform(k_bo, (2,), jnp.float32, -scale, scale),
    }

    x = jax.random.normal(k_x, (B, T, E), jnp.float32)
    # torch.rand_like(logits) equivalent: uniform [0, 1), generated in glue, consumed in-kernel.
    noise = jax.random.uniform(k_noise, (B, T, 2), jnp.float32)

    # training mode: soft mask (probabilities)
    mask = generator_forward(
        x, params, noise, temperature=temperature, threshold=threshold, training=True)
    mask = jax.block_until_ready(mask)

    assert mask.shape == (B, T), mask.shape
    assert mask.dtype == jnp.float32
    assert bool(jnp.all(jnp.isfinite(mask)))
    assert bool(jnp.all((mask >= 0.0) & (mask <= 1.0)))

    ref = generator_reference(
        x, params, noise, temperature=temperature, threshold=threshold, training=True)
    max_err = float(jnp.max(jnp.abs(mask - ref)))
    assert max_err < 5e-3, f"max abs err vs reference: {max_err}"

    # eval mode: hard mask (thresholded)
    hard = generator_forward(
        x, params, noise, temperature=temperature, threshold=threshold, training=False)
    hard = jax.block_until_ready(hard)
    assert hard.shape == (B, T)
    assert bool(jnp.all((hard == 0.0) | (hard == 1.0)))
    hard_ref = generator_reference(
        x, params, noise, temperature=temperature, threshold=threshold, training=False)
    assert bool(jnp.all(hard == hard_ref))

    print("KERNEL_OK")
</pallas_src>

<mosaic_0001>
module attributes {stable_mosaic.version = 11 : i64} {
  func.func @_generator_kernel(%arg0: memref<2x8x32xf32, #tpu.memory_space<vmem>>, %arg1: memref<2x8x2xf32, #tpu.memory_space<vmem>>, %arg2: memref<32x128xf32, #tpu.memory_space<vmem>>, %arg3: memref<32x128xf32, #tpu.memory_space<vmem>>, %arg4: memref<1x128xf32, #tpu.memory_space<vmem>>, %arg5: memref<32x1xf32, #tpu.memory_space<vmem>>, %arg6: memref<1xf32, #tpu.memory_space<smem>>, %arg7: memref<2x8xf32, #tpu.memory_space<vmem>>) attributes {dimension_semantics = [], scalar_prefetch = 0 : i64, scratch_operands = 0 : i64, tpu.core_type = #tpu.core_type<tc>} {
    %c0 = arith.constant 0 : index
    %c0_0 = arith.constant 0 : index
    %c0_1 = arith.constant 0 : index
    %0 = vector.load %arg0[%c0, %c0_0, %c0_1] : memref<2x8x32xf32, #tpu.memory_space<vmem>>, vector<2x8x32xf32>
    %1 = vector.shape_cast %0 : vector<2x8x32xf32> to vector<16x32xf32>
    %c0_2 = arith.constant 0 : index
    %c0_3 = arith.constant 0 : index
    %2 = vector.load %arg2[%c0_2, %c0_3] : memref<32x128xf32, #tpu.memory_space<vmem>>, vector<32x128xf32>
    %cst = arith.constant dense<0.000000e+00> : vector<16x128xf32>
    %3 = tpu.matmul %1, %2, %cst {dimension_numbers = #tpu.dot_dimension_numbers<[1], [0], [0], [1], [0, 0, 1, 1], [], []>} : vector<16x32xf32>, vector<32x128xf32>, vector<16x128xf32> -> vector<16x128xf32>
    %c0_4 = arith.constant 0 : index
    %c0_5 = arith.constant 0 : index
    %4 = vector.load %arg4[%c0_4, %c0_5] : memref<1x128xf32, #tpu.memory_space<vmem>>, vector<1x128xf32>
    %5 = vector.broadcast %4 : vector<1x128xf32> to vector<16x128xf32>
    %6 = arith.addf %3, %5 : vector<16x128xf32>
    %7 = vector.shape_cast %6 : vector<16x128xf32> to vector<2x8x128xf32>
    %c0_6 = arith.constant 0 : index
    %c0_7 = arith.constant 0 : index
    %8 = vector.load %arg3[%c0_6, %c0_7] : memref<32x128xf32, #tpu.memory_space<vmem>>, vector<32x128xf32>
    %cst_8 = arith.constant 0.000000e+00 : f32
    %9 = vector.broadcast %cst_8 : f32 to vector<2x32xf32>
    %10 = vector.extract_strided_slice %7 {offsets = [0, 0, 0], sizes = [2, 1, 128], strides = [1, 1, 1]} : vector<2x8x128xf32> to vector<2x1x128xf32>
    %11 = vector.shape_cast %10 : vector<2x1x128xf32> to vector<2x128xf32>
    %12 = vector.extract_strided_slice %11 {offsets = [0, 0], sizes = [2, 96], strides = [1, 1]} : vector<2x128xf32> to vector<2x96xf32>
    %13 = arith.negf %12 : vector<2x96xf32>
    %14 = math.exp %13 : vector<2x96xf32>
    %cst_9 = arith.constant 1.000000e+00 : f32
    %15 = vector.broadcast %cst_9 : f32 to vector<2x96xf32>
    %16 = arith.addf %15, %14 : vector<2x96xf32>
    %17 = arith.divf %15, %16 : vector<2x96xf32>
    %18 = vector.extract_strided_slice %11 {offsets = [0, 96], sizes = [2, 32], strides = [1, 1]} : vector<2x128xf32> to vector<2x32xf32>
    %19 = math.tanh %18 : vector<2x32xf32>
    %20 = vector.extract_strided_slice %17 {offsets = [0, 0], sizes = [2, 32], strides = [1, 1]} : vector<2x96xf32> to vector<2x32xf32>
    %21 = vector.extract_strided_slice %17 {offsets = [0, 32], sizes = [2, 32], strides = [1, 1]} : vector<2x96xf32> to vector<2x32xf32>
    %22 = vector.extract_strided_slice %17 {offsets = [0, 64], sizes = [2, 32], strides = [1, 1]} : vector<2x96xf32> to vector<2x32xf32>
    %23 = arith.mulf %21, %9 : vector<2x32xf32>
    %24 = arith.mulf %20, %19 : vector<2x32xf32>
    %25 = arith.addf %23, %24 : vector<2x32xf32>
    %26 = math.tanh %25 : vector<2x32xf32>
    %27 = arith.mulf %22, %26 : vector<2x32xf32>
    %28 = vector.extract_strided_slice %7 {offsets = [0, 1, 0], sizes = [2, 1, 128], strides = [1, 1, 1]} : vector<2x8x128xf32> to vector<2x1x128xf32>
    %29 = vector.shape_cast %28 : vector<2x1x128xf32> to vector<2x128xf32>
    %cst_10 = arith.constant dense<0.000000e+00> : vector<2x128xf32>
    %30 = tpu.matmul %27, %8, %cst_10 {dimension_numbers = #tpu.dot_dimension_numbers<[1], [0], [0], [1], [0, 0, 1, 1], [], []>} : vector<2x32xf32>, vector<32x128xf32>, vector<2x128xf32> -> vector<2x128xf32>
    %31 = arith.addf %29, %30 : vector<2x128xf32>
    %32 = vector.extract_strided_slice %31 {offsets = [0, 0], sizes = [2, 96], strides = [1, 1]} : vector<2x128xf32> to vector<2x96xf32>
    %33 = arith.negf %32 : vector<2x96xf32>
    %34 = math.exp %33 : vector<2x96xf32>
    %cst_11 = arith.constant 1.000000e+00 : f32
    %35 = vector.broadcast %cst_11 : f32 to vector<2x96xf32>
    %36 = arith.addf %35, %34 : vector<2x96xf32>
    %37 = arith.divf %35, %36 : vector<2x96xf32>
    %38 = vector.extract_strided_slice %31 {offsets = [0, 96], sizes = [2, 32], strides = [1, 1]} : vector<2x128xf32> to vector<2x32xf32>
    %39 = math.tanh %38 : vector<2x32xf32>
    %40 = vector.extract_strided_slice %37 {offsets = [0, 0], sizes = [2, 32], strides = [1, 1]} : vector<2x96xf32> to vector<2x32xf32>
    %41 = vector.extract_strided_slice %37 {offsets = [0, 32], sizes = [2, 32], strides = [1, 1]} : vector<2x96xf32> to vector<2x32xf32>
    %42 = vector.extract_strided_slice %37 {offsets = [0, 64], sizes = [2, 32], strides = [1, 1]} : vector<2x96xf32> to vector<2x32xf32>
    %43 = arith.mulf %41, %25 : vector<2x32xf32>
    %44 = arith.mulf %40, %39 : vector<2x32xf32>
    %45 = arith.addf %43, %44 : vector<2x32xf32>
    %46 = math.tanh %45 : vector<2x32xf32>
    %47 = arith.mulf %42, %46 : vector<2x32xf32>
    %48 = vector.extract_strided_slice %7 {offsets = [0, 2, 0], sizes = [2, 1, 128], strides = [1, 1, 1]} : vector<2x8x128xf32> to vector<2x1x128xf32>
    %49 = vector.shape_cast %48 : vector<2x1x128xf32> to vector<2x128xf32>
    %cst_12 = arith.constant dense<0.000000e+00> : vector<2x128xf32>
    %50 = tpu.matmul %47, %8, %cst_12 {dimension_numbers = #tpu.dot_dimension_numbers<[1], [0], [0], [1], [0, 0, 1, 1], [], []>} : vector<2x32xf32>, vector<32x128xf32>, vector<2x128xf32> -> vector<2x128xf32>
    %51 = arith.addf %49, %50 : vector<2x128xf32>
    %52 = vector.extract_strided_slice %51 {offsets = [0, 0], sizes = [2, 96], strides = [1, 1]} : vector<2x128xf32> to vector<2x96xf32>
    %53 = arith.negf %52 : vector<2x96xf32>
    %54 = math.exp %53 : vector<2x96xf32>
    %cst_13 = arith.constant 1.000000e+00 : f32
    %55 = vector.broadcast %cst_13 : f32 to vector<2x96xf32>
    %56 = arith.addf %55, %54 : vector<2x96xf32>
    %57 = arith.divf %55, %56 : vector<2x96xf32>
    %58 = vector.extract_strided_slice %51 {offsets = [0, 96], sizes = [2, 32], strides = [1, 1]} : vector<2x128xf32> to vector<2x32xf32>
    %59 = math.tanh %58 : vector<2x32xf32>
    %60 = vector.extract_strided_slice %57 {offsets = [0, 0], sizes = [2, 32], strides = [1, 1]} : vector<2x96xf32> to vector<2x32xf32>
    %61 = vector.extract_strided_slice %57 {offsets = [0, 32], sizes = [2, 32], strides = [1, 1]} : vector<2x96xf32> to vector<2x32xf32>
    %62 = vector.extract_strided_slice %57 {offsets = [0, 64], sizes = [2, 32], strides = [1, 1]} : vector<2x96xf32> to vector<2x32xf32>
    %63 = arith.mulf %61, %45 : vector<2x32xf32>
    %64 = arith.mulf %60, %59 : vector<2x32xf32>
    %65 = arith.addf %63, %64 : vector<2x32xf32>
    %66 = math.tanh %65 : vector<2x32xf32>
    %67 = arith.mulf %62, %66 : vector<2x32xf32>
    %68 = vector.extract_strided_slice %7 {offsets = [0, 3, 0], sizes = [2, 1, 128], strides = [1, 1, 1]} : vector<2x8x128xf32> to vector<2x1x128xf32>
    %69 = vector.shape_cast %68 : vector<2x1x128xf32> to vector<2x128xf32>
    %cst_14 = arith.constant dense<0.000000e+00> : vector<2x128xf32>
    %70 = tpu.matmul %67, %8, %cst_14 {dimension_numbers = #tpu.dot_dimension_numbers<[1], [0], [0], [1], [0, 0, 1, 1], [], []>} : vector<2x32xf32>, vector<32x128xf32>, vector<2x128xf32> -> vector<2x128xf32>
    %71 = arith.addf %69, %70 : vector<2x128xf32>
    %72 = vector.extract_strided_slice %71 {offsets = [0, 0], sizes = [2, 96], strides = [1, 1]} : vector<2x128xf32> to vector<2x96xf32>
    %73 = arith.negf %72 : vector<2x96xf32>
    %74 = math.exp %73 : vector<2x96xf32>
    %cst_15 = arith.constant 1.000000e+00 : f32
    %75 = vector.broadcast %cst_15 : f32 to vector<2x96xf32>
    %76 = arith.addf %75, %74 : vector<2x96xf32>
    %77 = arith.divf %75, %76 : vector<2x96xf32>
    %78 = vector.extract_strided_slice %71 {offsets = [0, 96], sizes = [2, 32], strides = [1, 1]} : vector<2x128xf32> to vector<2x32xf32>
    %79 = math.tanh %78 : vector<2x32xf32>
    %80 = vector.extract_strided_slice %77 {offsets = [0, 0], sizes = [2, 32], strides = [1, 1]} : vector<2x96xf32> to vector<2x32xf32>
    %81 = vector.extract_strided_slice %77 {offsets = [0, 32], sizes = [2, 32], strides = [1, 1]} : vector<2x96xf32> to vector<2x32xf32>
    %82 = vector.extract_strided_slice %77 {offsets = [0, 64], sizes = [2, 32], strides = [1, 1]} : vector<2x96xf32> to vector<2x32xf32>
    %83 = arith.mulf %81, %65 : vector<2x32xf32>
    %84 = arith.mulf %80, %79 : vector<2x32xf32>
    %85 = arith.addf %83, %84 : vector<2x32xf32>
    %86 = math.tanh %85 : vector<2x32xf32>
    %87 = arith.mulf %82, %86 : vector<2x32xf32>
    %88 = vector.extract_strided_slice %7 {offsets = [0, 4, 0], sizes = [2, 1, 128], strides = [1, 1, 1]} : vector<2x8x128xf32> to vector<2x1x128xf32>
    %89 = vector.shape_cast %88 : vector<2x1x128xf32> to vector<2x128xf32>
    %cst_16 = arith.constant dense<0.000000e+00> : vector<2x128xf32>
    %90 = tpu.matmul %87, %8, %cst_16 {dimension_numbers = #tpu.dot_dimension_numbers<[1], [0], [0], [1], [0, 0, 1, 1], [], []>} : vector<2x32xf32>, vector<32x128xf32>, vector<2x128xf32> -> vector<2x128xf32>
    %91 = arith.addf %89, %90 : vector<2x128xf32>
    %92 = vector.extract_strided_slice %91 {offsets = [0, 0], sizes = [2, 96], strides = [1, 1]} : vector<2x128xf32> to vector<2x96xf32>
    %93 = arith.negf %92 : vector<2x96xf32>
    %94 = math.exp %93 : vector<2x96xf32>
    %cst_17 = arith.constant 1.000000e+00 : f32
    %95 = vector.broadcast %cst_17 : f32 to vector<2x96xf32>
    %96 = arith.addf %95, %94 : vector<2x96xf32>
    %97 = arith.divf %95, %96 : vector<2x96xf32>
    %98 = vector.extract_strided_slice %91 {offsets = [0, 96], sizes = [2, 32], strides = [1, 1]} : vector<2x128xf32> to vector<2x32xf32>
    %99 = math.tanh %98 : vector<2x32xf32>
    %100 = vector.extract_strided_slice %97 {offsets = [0, 0], sizes = [2, 32], strides = [1, 1]} : vector<2x96xf32> to vector<2x32xf32>
    %101 = vector.extract_strided_slice %97 {offsets = [0, 32], sizes = [2, 32], strides = [1, 1]} : vector<2x96xf32> to vector<2x32xf32>
    %102 = vector.extract_strided_slice %97 {offsets = [0, 64], sizes = [2, 32], strides = [1, 1]} : vector<2x96xf32> to vector<2x32xf32>
    %103 = arith.mulf %101, %85 : vector<2x32xf32>
    %104 = arith.mulf %100, %99 : vector<2x32xf32>
    %105 = arith.addf %103, %104 : vector<2x32xf32>
    %106 = math.tanh %105 : vector<2x32xf32>
    %107 = arith.mulf %102, %106 : vector<2x32xf32>
    %108 = vector.extract_strided_slice %7 {offsets = [0, 5, 0], sizes = [2, 1, 128], strides = [1, 1, 1]} : vector<2x8x128xf32> to vector<2x1x128xf32>
    %109 = vector.shape_cast %108 : vector<2x1x128xf32> to vector<2x128xf32>
    %cst_18 = arith.constant dense<0.000000e+00> : vector<2x128xf32>
    %110 = tpu.matmul %107, %8, %cst_18 {dimension_numbers = #tpu.dot_dimension_numbers<[1], [0], [0], [1], [0, 0, 1, 1], [], []>} : vector<2x32xf32>, vector<32x128xf32>, vector<2x128xf32> -> vector<2x128xf32>
    %111 = arith.addf %109, %110 : vector<2x128xf32>
    %112 = vector.extract_strided_slice %111 {offsets = [0, 0], sizes = [2, 96], strides = [1, 1]} : vector<2x128xf32> to vector<2x96xf32>
    %113 = arith.negf %112 : vector<2x96xf32>
    %114 = math.exp %113 : vector<2x96xf32>
    %cst_19 = arith.constant 1.000000e+00 : f32
    %115 = vector.broadcast %cst_19 : f32 to vector<2x96xf32>
    %116 = arith.addf %115, %114 : vector<2x96xf32>
    %117 = arith.divf %115, %116 : vector<2x96xf32>
    %118 = vector.extract_strided_slice %111 {offsets = [0, 96], sizes = [2, 32], strides = [1, 1]} : vector<2x128xf32> to vector<2x32xf32>
    %119 = math.tanh %118 : vector<2x32xf32>
    %120 = vector.extract_strided_slice %117 {offsets = [0, 0], sizes = [2, 32], strides = [1, 1]} : vector<2x96xf32> to vector<2x32xf32>
    %121 = vector.extract_strided_slice %117 {offsets = [0, 32], sizes = [2, 32], strides = [1, 1]} : vector<2x96xf32> to vector<2x32xf32>
    %122 = vector.extract_strided_slice %117 {offsets = [0, 64], sizes = [2, 32], strides = [1, 1]} : vector<2x96xf32> to vector<2x32xf32>
    %123 = arith.mulf %121, %105 : vector<2x32xf32>
    %124 = arith.mulf %120, %119 : vector<2x32xf32>
    %125 = arith.addf %123, %124 : vector<2x32xf32>
    %126 = math.tanh %125 : vector<2x32xf32>
    %127 = arith.mulf %122, %126 : vector<2x32xf32>
    %128 = vector.extract_strided_slice %7 {offsets = [0, 6, 0], sizes = [2, 1, 128], strides = [1, 1, 1]} : vector<2x8x128xf32> to vector<2x1x128xf32>
    %129 = vector.shape_cast %128 : vector<2x1x128xf32> to vector<2x128xf32>
    %cst_20 = arith.constant dense<0.000000e+00> : vector<2x128xf32>
    %130 = tpu.matmul %127, %8, %cst_20 {dimension_numbers = #tpu.dot_dimension_numbers<[1], [0], [0], [1], [0, 0, 1, 1], [], []>} : vector<2x32xf32>, vector<32x128xf32>, vector<2x128xf32> -> vector<2x128xf32>
    %131 = arith.addf %129, %130 : vector<2x128xf32>
    %132 = vector.extract_strided_slice %131 {offsets = [0, 0], sizes = [2, 96], strides = [1, 1]} : vector<2x128xf32> to vector<2x96xf32>
    %133 = arith.negf %132 : vector<2x96xf32>
    %134 = math.exp %133 : vector<2x96xf32>
    %cst_21 = arith.constant 1.000000e+00 : f32
    %135 = vector.broadcast %cst_21 : f32 to vector<2x96xf32>
    %136 = arith.addf %135, %134 : vector<2x96xf32>
    %137 = arith.divf %135, %136 : vector<2x96xf32>
    %138 = vector.extract_strided_slice %131 {offsets = [0, 96], sizes = [2, 32], strides = [1, 1]} : vector<2x128xf32> to vector<2x32xf32>
    %139 = math.tanh %138 : vector<2x32xf32>
    %140 = vector.extract_strided_slice %137 {offsets = [0, 0], sizes = [2, 32], strides = [1, 1]} : vector<2x96xf32> to vector<2x32xf32>
    %141 = vector.extract_strided_slice %137 {offsets = [0, 32], sizes = [2, 32], strides = [1, 1]} : vector<2x96xf32> to vector<2x32xf32>
    %142 = vector.extract_strided_slice %137 {offsets = [0, 64], sizes = [2, 32], strides = [1, 1]} : vector<2x96xf32> to vector<2x32xf32>
    %143 = arith.mulf %141, %125 : vector<2x32xf32>
    %144 = arith.mulf %140, %139 : vector<2x32xf32>
    %145 = arith.addf %143, %144 : vector<2x32xf32>
    %146 = math.tanh %145 : vector<2x32xf32>
    %147 = arith.mulf %142, %146 : vector<2x32xf32>
    %148 = vector.extract_strided_slice %7 {offsets = [0, 7, 0], sizes = [2, 1, 128], strides = [1, 1, 1]} : vector<2x8x128xf32> to vector<2x1x128xf32>
    %149 = vector.shape_cast %148 : vector<2x1x128xf32> to vector<2x128xf32>
    %cst_22 = arith.constant dense<0.000000e+00> : vector<2x128xf32>
    %150 = tpu.matmul %147, %8, %cst_22 {dimension_numbers = #tpu.dot_dimension_numbers<[1], [0], [0], [1], [0, 0, 1, 1], [], []>} : vector<2x32xf32>, vector<32x128xf32>, vector<2x128xf32> -> vector<2x128xf32>
    %151 = arith.addf %149, %150 : vector<2x128xf32>
    %152 = vector.extract_strided_slice %151 {offsets = [0, 0], sizes = [2, 96], strides = [1, 1]} : vector<2x128xf32> to vector<2x96xf32>
    %153 = arith.negf %152 : vector<2x96xf32>
    %154 = math.exp %153 : vector<2x96xf32>
    %cst_23 = arith.constant 1.000000e+00 : f32
    %155 = vector.broadcast %cst_23 : f32 to vector<2x96xf32>
    %156 = arith.addf %155, %154 : vector<2x96xf32>
    %157 = arith.divf %155, %156 : vector<2x96xf32>
    %158 = vector.extract_strided_slice %151 {offsets = [0, 96], sizes = [2, 32], strides = [1, 1]} : vector<2x128xf32> to vector<2x32xf32>
    %159 = math.tanh %158 : vector<2x32xf32>
    %160 = vector.extract_strided_slice %157 {offsets = [0, 0], sizes = [2, 32], strides = [1, 1]} : vector<2x96xf32> to vector<2x32xf32>
    %161 = vector.extract_strided_slice %157 {offsets = [0, 32], sizes = [2, 32], strides = [1, 1]} : vector<2x96xf32> to vector<2x32xf32>
    %162 = vector.extract_strided_slice %157 {offsets = [0, 64], sizes = [2, 32], strides = [1, 1]} : vector<2x96xf32> to vector<2x32xf32>
    %163 = arith.mulf %161, %145 : vector<2x32xf32>
    %164 = arith.mulf %160, %159 : vector<2x32xf32>
    %165 = arith.addf %163, %164 : vector<2x32xf32>
    %166 = math.tanh %165 : vector<2x32xf32>
    %167 = arith.mulf %162, %166 : vector<2x32xf32>
    %168 = vector.shape_cast %27 : vector<2x32xf32> to vector<2x1x32xf32>
    %169 = vector.shape_cast %47 : vector<2x32xf32> to vector<2x1x32xf32>
    %170 = vector.shape_cast %67 : vector<2x32xf32> to vector<2x1x32xf32>
    %171 = vector.shape_cast %87 : vector<2x32xf32> to vector<2x1x32xf32>
    %172 = vector.shape_cast %107 : vector<2x32xf32> to vector<2x1x32xf32>
    %173 = vector.shape_cast %127 : vector<2x32xf32> to vector<2x1x32xf32>
    %174 = vector.shape_cast %147 : vector<2x32xf32> to vector<2x1x32xf32>
    %175 = vector.shape_cast %167 : vector<2x32xf32> to vector<2x1x32xf32>
    %176 = tpu.concatenate %168, %169, %170, %171, %172, %173, %174, %175 in 1 : vector<2x1x32xf32>, vector<2x1x32xf32>, vector<2x1x32xf32>, vector<2x1x32xf32>, vector<2x1x32xf32>, vector<2x1x32xf32>, vector<2x1x32xf32>, vector<2x1x32xf32> -> vector<2x8x32xf32>
    %177 = vector.shape_cast %176 : vector<2x8x32xf32> to vector<16x32xf32>
    %c0_24 = arith.constant 0 : index
    %c0_25 = arith.constant 0 : index
    %178 = vector.load %arg5[%c0_24, %c0_25] : memref<32x1xf32, #tpu.memory_space<vmem>>, vector<32x1xf32>
    %cst_26 = arith.constant dense<0.000000e+00> : vector<16x1xf32>
    %179 = tpu.matmul %177, %178, %cst_26 {dimension_numbers = #tpu.dot_dimension_numbers<[1], [0], [0], [1], [0, 0, 1, 1], [], []>} : vector<16x32xf32>, vector<32x1xf32>, vector<16x1xf32> -> vector<16x1xf32>
    %180 = vector.shape_cast %179 : vector<16x1xf32> to vector<2x8xf32>
    %c0_27 = arith.constant 0 : index
    %c0_28 = arith.constant 0 : index
    %c0_29 = arith.constant 0 : index
    %181 = vector.load %arg1[%c0_27, %c0_28, %c0_29] : memref<2x8x2xf32, #tpu.memory_space<vmem>>, vector<2x8x2xf32>
    %cst_30 = arith.constant 9.99999971E-10 : f32
    %182 = vector.broadcast %cst_30 : f32 to vector<2x8x2xf32>
    %183 = arith.addf %181, %182 : vector<2x8x2xf32>
    %184 = math.log %183 : vector<2x8x2xf32>
    %cst_31 = arith.constant 0.000000e+00 : f32
    %185 = vector.broadcast %cst_31 : f32 to vector<2x8x2xf32>
    %186 = arith.subf %185, %184 : vector<2x8x2xf32>
    %cst_32 = arith.constant 9.99999971E-10 : f32
    %187 = vector.broadcast %cst_32 : f32 to vector<2x8x2xf32>
    %188 = arith.addf %186, %187 : vector<2x8x2xf32>
    %189 = math.log %188 : vector<2x8x2xf32>
    %cst_33 = arith.constant 0.000000e+00 : f32
    %190 = vector.broadcast %cst_33 : f32 to vector<2x8x2xf32>
    %191 = arith.subf %190, %189 : vector<2x8x2xf32>
    %192 = vector.extract_strided_slice %191 {offsets = [0, 0, 1], sizes = [2, 8, 1], strides = [1, 1, 1]} : vector<2x8x2xf32> to vector<2x8x1xf32>
    %193 = vector.shape_cast %192 : vector<2x8x1xf32> to vector<2x8xf32>
    %194 = vector.extract_strided_slice %191 {offsets = [0, 0, 0], sizes = [2, 8, 1], strides = [1, 1, 1]} : vector<2x8x2xf32> to vector<2x8x1xf32>
    %195 = vector.shape_cast %194 : vector<2x8x1xf32> to vector<2x8xf32>
    %196 = arith.subf %193, %195 : vector<2x8xf32>
    %cst_34 = arith.constant 1.000000e+00 : f32
    %197 = vector.broadcast %cst_34 : f32 to vector<2x8xf32>
    %198 = arith.mulf %196, %197 : vector<2x8xf32>
    %c0_35 = arith.constant 0 : index
    %199 = memref.load %arg6[%c0_35] : memref<1xf32, #tpu.memory_space<smem>>
    %200 = vector.broadcast %199 : f32 to vector<2x8xf32>
    %201 = arith.addf %180, %200 : vector<2x8xf32>
    %202 = arith.addf %201, %198 : vector<2x8xf32>
    %203 = arith.negf %202 : vector<2x8xf32>
    %204 = math.exp %203 : vector<2x8xf32>
    %cst_36 = arith.constant 1.000000e+00 : f32
    %205 = vector.broadcast %cst_36 : f32 to vector<2x8xf32>
    %206 = arith.addf %205, %204 : vector<2x8xf32>
    %207 = arith.divf %205, %206 : vector<2x8xf32>
    %c0_37 = arith.constant 0 : index
    %c0_38 = arith.constant 0 : index
    %208 = vector.load %arg7[%c0_37, %c0_38] : memref<2x8xf32, #tpu.memory_space<vmem>>, vector<2x8xf32>
    tpu.vector_store %arg7[%c0_37, %c0_38], %207 {strides = array<i32>} : memref<2x8xf32, #tpu.memory_space<vmem>>, vector<2x8xf32>,
    return
  }
}

</mosaic_0001>

<bundles_post_ra>
// kernel: tpu_custom_call.1
= control target key start
LH: loop header
LB: loop body
LE: loop exit
PB: predicated region body
PF: predicated region fallthrough
CT: control target
= control target key end

     0   :  { %13 = vsyncpa [#allocation4], 0  ;;  %s2076_s0 = inlined_call_operand.vmem [shape: f32[2,8,32], index: 0, kind: input, shape index: {}]   ;;  %s2077_s1 = inlined_call_operand.vmem [shape: f32[2,8,2], index: 1, kind: input, shape index: {}]   ;;  %s2078_s2 = inlined_call_operand.vmem [shape: f32[32,128], index: 2, kind: input, shape index: {}]   ;;  %s2079_s3 = inlined_call_operand.hbm [shape: f32[32,128], index: 3, kind: input, shape index: {}]   ;;  %s2080_s4 = inlined_call_operand.vmem [shape: f32[1,128], index: 4, kind: input, shape index: {}]   ;;  %s2081_s5 = inlined_call_operand.vmem [shape: f32[32,1], index: 5, kind: input, shape index: {}]   ;;  %s2082_s6 = inlined_call_operand.<no memory space> [shape: f32[1], index: 6, kind: input, shape index: {}]   ;;  %s2083_s7 = inlined_call_operand.hbm [shape: f32[2,8], index: 7, kind: output, shape index: {}]  }
   0x1   :  { %14 = vsyncpa [#allocation5], 0  ;;  %s1745_s24 = smov [#allocation3]  }
   0x2   :  { %s26_s25 = sshll.u32 %s1745_s24, 4  ;;  %s27_s25 = int_to_ptr.vmem [resolvable:$true] %s26_s25 }
   0x3   :  { %s1709_s26 = scalar_lea.vmem %s27_s25, 512  ;;  %p1714_p1 = scmp.lt.s32.totalorder %s27_s25, %s27_s25 }
   0x4   :  { %p1710_p0 = scmp.ne.s32.totalorder %s27_s25, %s1709_s26  ;;  %p1715_p2 = scmp.lt.s32.totalorder %s1709_s26, %s1709_s26 }
   0x6   :  { %p1716_p3 = por %p1715_p2, %p1714_p1 }
   0x8   :  { %p1717_p4 = pnand %p1716_p3, %p1710_p0 }
   0xa   :  { %1720 = shalt.err (!%p1717_p4)
}
   0xb   :  { %s1746_s27 = smov 128   ;;  %s1747_s28 = smov 8  }
   0xc   :  { %32 = dma.hbm_to_vmem [thread:$0]  %s2079_s3, 512, %s27_s25, [#allocation4], %s1746_s27, %s1746_s27, %s1747_s28  }
   0xd   :  { %1741 = dma.done.wait [#allocation4], 512  }
   0xe   :  { %1742 = vsyncadd [#allocation4], 4294966784  ;;  %vm55_vm0 = vcmask 261120   ;;  %v47_v0 = vld [vmem:[%s2078_s2 + $0x18] sm:$0xff]  ;;  %v46_v1 = vld [vmem:[%s2078_s2 + $0x10] sm:$0xff]  ;;  %v1749_v32 = vmov 0.0  }
   0xf   :  { %1445 = vmatprep.subr.mxu0 %v47_v0  ;;  %v42_v2 = vld [vmem:[%s2076_s0] sm:$0xff]  ;;  %v45_v3 = vld [vmem:[%s2078_s2 + $0x8] sm:$0xff]  ;;  %v1840_v31 = vld [vmem:[#allocation3 + $0x18] sm:$0xff]  ;;  %1456 = vmatprep.subr.mxu1 %v1749_v32  ;;  %vm1750_vm1 = vmmov 0   ;;  %vm192_vm2 = vcmask 1041409   ;;  %vm1167_vm3 = vcmask 1040384  }
  0x10   :  { %1446 = vmatpush3.msra.mxu0 %v47_v0  ;;  %1453 = vmatprep.mubr.msk.f32.mxu0 %vm55_vm0, %v42_v2  ;;  %v44_v4 = vld [vmem:[%s2078_s2] sm:$0xff]  ;;  %v43_v5 = vld [vmem:[%s2076_s0 + $0x8] sm:$0xff]  ;;  %s1748_s0 = smov 32   ;;  %v1843_v33 = vld [vmem:[#allocation3 + $0x10] sm:$0xff]  ;;  %s1751_s2 = smov 64   ;;  %vm1170_vm4 = vcmask 1041408  }
  0x11   :  { %1447 = vmatprep.subr.mxu0 %v46_v1  ;;  %v1368_v6 = vld [vmem:[%s2080_s4] ss:$0 sm:$0xff]  ;;  %1464 = vmatprep.mubr.msk.f32.mxu1 %vm1750_vm1, %v1749_v32  ;;  %v1850_v34 = vld [vmem:[#allocation3 + $0x8] sm:$0xff]  ;;  %vm1173_vm5 = vcmask 1042432   ;;  %vm1176_vm6 = vcmask 1043456   ;;  %vm1179_vm7 = vcmask 1044480  }
  0x12   :  { %1448 = vmatpush3.msra.mxu0 %v46_v1  ;;  %1457 = vmatpush3.msra.mxu1 %v1840_v31  ;;  %v1856_v36 = vld [vmem:[#allocation3] sm:$0xff]  ;;  %vm1182_vm8 = vcmask 1045504   ;;  %vm1185_vm9 = vcmask 1046528   ;;  %vm1351_vm10 = vcmask 58368  }
  0x13   :  { %1449 = vmatprep.subr.mxu0 %v45_v3  ;;  %1458 = vmatprep.subr.mxu1 %v1749_v32 }
  0x14   :  { %1450 = vmatpush3.msra.mxu0 %v45_v3  ;;  %1459 = vmatpush3.msra.mxu1 %v1843_v33 }
  0x15   :  { %1451 = vmatprep.subr.mxu0 %v44_v4  ;;  %1460 = vmatprep.subr.mxu1 %v1749_v32 }
  0x16   :  { %1452 = vmatpush3.msra.mxu0 %v44_v4  ;;  %1461 = vmatpush3.msra.mxu1 %v1850_v34 }
  0x17   :  { %1454 = vmatmul.mubr.msk.f32.vlgmr.msra.gmra.mxu0 %vm55_vm0, %v43_v5  ;;  %1467 = vmatprep.subr.mxu0 %v1749_v32 }
  0x18   :  { %1468 = vmatpush3.msra.mxu0 %v1840_v31  ;;  %1462 = vmatprep.subr.mxu1 %v1749_v32 }
  0x19   :  { %1469 = vmatprep.subr.mxu0 %v1749_v32  ;;  %1463 = vmatpush3.msra.mxu1 %v1856_v36 }
  0x1a   :  { %1470 = vmatpush3.msra.mxu0 %v1843_v33  ;;  %1475 = vmatprep.mubr.msk.f32.mxu0 %vm1750_vm1, %v1749_v32 }
  0x1b   :  { %1471 = vmatprep.subr.mxu0 %v1749_v32  ;;  %1478 = vmatprep.subr.mxu1 %v1749_v32 }
  0x1c   :  { %1472 = vmatpush3.msra.mxu0 %v1850_v34 }
  0x1d   :  { %1473 = vmatprep.subr.mxu0 %v1749_v32 }
  0x1e   :  { %1474 = vmatpush3.msra.mxu0 %v1856_v36 }
  0x1f   :  { %1489 = vmatprep.subr.mxu0 %v1749_v32 }
  0xd7   :  { %v1455_v7 = vpop.f32.mrf.mxu0 }
  0xd8   :  { %v1822_v8 = vadd.f32 %v1455_v7, %v1368_v6 }
  0xd9   :  { %v128_v9 = vpop.f32.mrf.mxu0 }
  0xda   :  { %v1824_v10 = vadd.f32 %v1368_v6, %v128_v9  ;;  %1557 = vtanh.f32 %v1822_v8  ;;  %v1372_v13 = vmul.f32 -1.442695, %v1822_v8 }
  0xdc   :  { %1559 = vtanh.f32 %v1824_v10  ;;  %v1371_v14 = vmul.f32 -1.442695, %v1824_v10 }
  0xdd   :  { %1561 = vpow2.f32 %v1372_v13 }
  0xde   :  { %1563 = vpow2.f32 %v1371_v14 }
  0xe7   :  { %v1558_v11 = vpop.eup %1557 }
  0xe8   :  { %161 = vrot.lane.b32.xlu0 %v1558_v11, %s1748_s0 }
  0xe9   :  { %v1560_v12 = vpop.eup %1559 }
  0xea   :  { %v1562_v15 = vpop.eup %1561 }
  0xeb   :  { %v148_v16 = vadd.f32 1.0, %v1562_v15  ;;  %v1564_v17 = vpop.eup %1563 }
  0xec   :  { %159 = vrot.lane.b32.xlu0 %v1560_v12, %s1748_s0  ;;  %v147_v18 = vadd.f32 1.0, %v1564_v17 }
  0xed   :  { %1565 = vrcp.f32 %v148_v16 }
  0xee   :  { %1567 = vrcp.f32 %v147_v18 }
  0xfa   :  { %v1566_v19 = vpop.eup %1565 }
  0xfb   :  { %v1568_v22 = vpop.eup %1567  ;;  %v156_v25 = vmul.f32 0.0, %v1566_v19 }
  0xfc   :  { %v155_v28 = vmul.f32 0.0, %v1568_v22 }
 0x15a   :  { %v162_v20 = vpop.permute.xlu0 %161 }
 0x15b   :  { %v166_v21 = vmul.f32 %v1566_v19, %v162_v20 }
 0x15d   :  { %171 = vrot.lane.b32.xlu1 %v166_v21, %s1748_s0 }
 0x15e   :  { %v160_v23 = vpop.permute.xlu0 %159 }
 0x15f   :  { %v165_v24 = vmul.f32 %v1568_v22, %v160_v23 }
 0x161   :  { %169 = vrot.lane.b32.xlu1 %v165_v24, %s1748_s0 }
 0x1cf   :  { %v172_v26 = vpop.permute.xlu1 %171 }
 0x1d0   :  { %v1834_v27 = vadd.f32 %v172_v26, %v156_v25 }
 0x1d2   :  { %1569 = vtanh.f32 %v1834_v27  ;;  %v291_v0 = vrot.slane %v1834_v27, 7 }
 0x1d3   :  { %v170_v29 = vpop.permute.xlu1 %169 }
 0x1d4   :  { %v1837_v30 = vadd.f32 %v170_v29, %v155_v28 }
 0x1d6   :  { %1571 = vtanh.f32 %v1837_v30  ;;  %v290_v2 = vrot.slane %v1837_v30, 7 }
 0x1df   :  { %v1570_v35 = vpop.eup %1569 }
 0x1e0   :  { %183 = vrot.lane.b32.xlu0 %v1570_v35, %s1748_s0 }
 0x1e3   :  { %v1572_v37 = vpop.eup %1571 }
 0x1e4   :  { %181 = vrot.lane.b32.xlu1 %v1572_v37, %s1748_s0 }
 0x252   :  { %v184_v38 = vpop.permute.xlu0 %183 }
 0x253   :  { %v1872_v39 = vmul.f32 %v1566_v19, %v184_v38 }
 0x255   :  { %v191_v41 = vrot.slane %v1872_v39, 7 }
 0x256   :  { %v182_v40 = vpop.permute.xlu1 %181 }
 0x257   :  { %v1875_v42 = vmul.f32 %v1568_v22, %v182_v40 }
 0x259   :  { %v193_v43 = vsel %vm192_vm2, %v191_v41, %v1875_v42 }
 0x25a   :  { %194 = vrot.lane.b32.xlu0 %v193_v43, %s1751_s2 }
 0x2cc   :  { %v195_v44 = vpop.permute.xlu0 %194 }
 0x2cd   :  { %1465 = vmatmul.mubr.msk.f32.vlgmr.msra.gmra.mxu1 %vm55_vm0, %v195_v44 }
 0x2ce   :  { %1479 = vmatpush3.msra.mxu1 %v1840_v31  ;;  %1486 = vmatprep.mubr.msk.f32.mxu1 %vm1750_vm1, %v1749_v32 }
 0x2cf   :  { %1480 = vmatprep.subr.mxu1 %v1749_v32 }
 0x2d0   :  { %1481 = vmatpush3.msra.mxu1 %v1843_v33 }
 0x2d1   :  { %1482 = vmatprep.subr.mxu1 %v1749_v32 }
 0x2d2   :  { %1483 = vmatpush3.msra.mxu1 %v1850_v34 }
 0x2d3   :  { %1484 = vmatprep.subr.mxu1 %v1749_v32 }
 0x2d4   :  { %1485 = vmatpush3.msra.mxu1 %v1856_v36 }
 0x2d5   :  { %1500 = vmatprep.subr.mxu1 %v1749_v32 }
 0x38d   :  { %v264_v45 = vpop.f32.mrf.mxu1 }
 0x38e   :  { %v269_v46 = vrot.slane %v264_v45, 7  ;;  %v273_v47 = vadd.f32 %v264_v45, %v1822_v8 }
 0x38f   :  { %v1466_v48 = vpop.f32.mrf.mxu1 }
 0x390   :  { %v272_v49 = vadd.f32 %v269_v46, %v1824_v10  ;;  %1573 = vtanh.f32 %v273_v47  ;;  %v1375_v52 = vmul.f32 -1.442695, %v273_v47 }
 0x392   :  { %1575 = vtanh.f32 %v272_v49  ;;  %v1374_v53 = vmul.f32 -1.442695, %v272_v49 }
 0x393   :  { %1577 = vpow2.f32 %v1375_v52 }
 0x394   :  { %1579 = vpow2.f32 %v1374_v53 }
 0x39d   :  { %v1574_v50 = vpop.eup %1573 }
 0x39e   :  { %300 = vrot.lane.b32.xlu0 %v1574_v50, %s1748_s0 }
 0x39f   :  { %v1576_v51 = vpop.eup %1575 }
 0x3a0   :  { %298 = vrot.lane.b32.xlu1 %v1576_v51, %s1748_s0  ;;  %v1578_v54 = vpop.eup %1577 }
 0x3a1   :  { %v1580_v55 = vpop.eup %1579  ;;  %v281_v56 = vadd.f32 1.0, %v1578_v54 }
 0x3a2   :  { %v280_v57 = vadd.f32 1.0, %v1580_v55 }
 0x3a3   :  { %1581 = vrcp.f32 %v281_v56 }
 0x3a4   :  { %1583 = vrcp.f32 %v280_v57 }
 0x3b0   :  { %v1582_v58 = vpop.eup %1581 }
 0x3b1   :  { %v1584_v61 = vpop.eup %1583  ;;  %v295_v1 = vmul.f32 %v1582_v58, %v291_v0 }
 0x3b2   :  { %v294_v5 = vmul.f32 %v1584_v61, %v290_v2 }
 0x410   :  { %v301_v59 = vpop.permute.xlu0 %300 }
 0x411   :  { %v305_v60 = vmul.f32 %v1582_v58, %v301_v59 }
 0x412   :  { %v299_v62 = vpop.permute.xlu1 %298 }
 0x413   :  { %310 = vrot.lane.b32.xlu0 %v305_v60, %s1748_s0  ;;  %v304_v63 = vmul.f32 %v1584_v61, %v299_v62 }
 0x415   :  { %308 = vrot.lane.b32.xlu1 %v304_v63, %s1748_s0 }
 0x485   :  { %v311_v3 = vpop.permute.xlu0 %310 }
 0x486   :  { %v315_v4 = vadd.f32 %v311_v3, %v295_v1 }
 0x487   :  { %v309_v6 = vpop.permute.xlu1 %308 }
 0x488   :  { %1585 = vtanh.f32 %v315_v4  ;;  %v314_v7 = vadd.f32 %v309_v6, %v294_v5  ;;  %v430_v47 = vrot.slane %v315_v4, 7 }
 0x48a   :  { %1587 = vtanh.f32 %v314_v7  ;;  %v429_v46 = vrot.slane %v314_v7, 7 }
 0x495   :  { %v1586_v9 = vpop.eup %1585 }
 0x496   :  { %322 = vrot.lane.b32.xlu0 %v1586_v9, %s1748_s0 }
 0x497   :  { %v1588_v11 = vpop.eup %1587 }
 0x498   :  { %320 = vrot.lane.b32.xlu1 %v1588_v11, %s1748_s0 }
 0x508   :  { %v323_v12 = vpop.permute.xlu0 %322 }
 0x509   :  { %v1903_v15 = vmul.f32 %v1582_v58, %v323_v12 }
 0x50a   :  { %v321_v13 = vpop.permute.xlu1 %320 }
 0x50b   :  { %v1901_v14 = vmul.f32 %v1584_v61, %v321_v13  ;;  %v1169_v61 = vsel %vm1167_vm3, %v1872_v39, %v1903_v15 }
 0x50d   :  { %v330_v16 = vrot.slane %v1901_v14, 1  ;;  %v1168_v59 = vsel %vm1167_vm3, %v1875_v42, %v1901_v14 }
 0x50f   :  { %v331_v17 = vsel %vm192_vm2, %v1903_v15, %v330_v16 }
 0x510   :  { %332 = vrot.lane.b32.xlu1 %v331_v17, %s1751_s2 }
 0x582   :  { %v333_v18 = vpop.permute.xlu1 %332 }
 0x583   :  { %1476 = vmatmul.mubr.msk.f32.vlgmr.msra.gmra.mxu0 %vm55_vm0, %v333_v18 }
 0x584   :  { %1490 = vmatpush3.msra.mxu0 %v1840_v31  ;;  %1497 = vmatprep.mubr.msk.f32.mxu0 %vm1750_vm1, %v1749_v32 }
 0x585   :  { %1491 = vmatprep.subr.mxu0 %v1749_v32 }
 0x586   :  { %1492 = vmatpush3.msra.mxu0 %v1843_v33 }
 0x587   :  { %1493 = vmatprep.subr.mxu0 %v1749_v32 }
 0x588   :  { %1494 = vmatpush3.msra.mxu0 %v1850_v34 }
 0x589   :  { %1495 = vmatprep.subr.mxu0 %v1749_v32 }
 0x58a   :  { %1496 = vmatpush3.msra.mxu0 %v1856_v36 }
 0x58b   :  { %1511 = vmatprep.subr.mxu0 %v1749_v32 }
 0x643   :  { %v402_v19 = vpop.f32.mrf.mxu0 }
 0x644   :  { %v407_v20 = vrot.slane %v402_v19, 6  ;;  %v408_v21 = vrot.slane %v402_v19, 7 }
 0x645   :  { %v1477_v22 = vpop.f32.mrf.mxu0 }
 0x646   :  { %v411_v23 = vadd.f32 %v407_v20, %v1824_v10  ;;  %v412_v24 = vadd.f32 %v408_v21, %v1822_v8 }
 0x648   :  { %1589 = vtanh.f32 %v411_v23  ;;  %v1377_v27 = vmul.f32 -1.442695, %v411_v23  ;;  %v1378_v28 = vmul.f32 -1.442695, %v412_v24 }
 0x649   :  { %1591 = vtanh.f32 %v412_v24 }
 0x64a   :  { %1593 = vpow2.f32 %v1377_v27 }
 0x64b   :  { %1595 = vpow2.f32 %v1378_v28 }
 0x655   :  { %v1590_v25 = vpop.eup %1589 }
 0x656   :  { %v1592_v26 = vpop.eup %1591  ;;  %437 = vrot.lane.b32.xlu0 %v1590_v25, %s1748_s0 }
 0x657   :  { %439 = vrot.lane.b32.xlu1 %v1592_v26, %s1748_s0  ;;  %v1594_v29 = vpop.eup %1593 }
 0x658   :  { %v1596_v30 = vpop.eup %1595  ;;  %v419_v35 = vadd.f32 1.0, %v1594_v29 }
 0x659   :  { %v420_v37 = vadd.f32 1.0, %v1596_v30 }
 0x65a   :  { %1597 = vrcp.f32 %v419_v35 }
 0x65b   :  { %1599 = vrcp.f32 %v420_v37 }
 0x667   :  { %v1598_v38 = vpop.eup %1597 }
 0x668   :  { %v1600_v41 = vpop.eup %1599  ;;  %v433_v48 = vmul.f32 %v1598_v38, %v429_v46 }
 0x669   :  { %v434_v49 = vmul.f32 %v1600_v41, %v430_v47 }
 0x6c8   :  { %v438_v40 = vpop.permute.xlu0 %437 }
 0x6c9   :  { %v440_v43 = vpop.permute.xlu1 %439  ;;  %v443_v44 = vmul.f32 %v1598_v38, %v438_v40 }
 0x6ca   :  { %v444_v45 = vmul.f32 %v1600_v41, %v440_v43 }
 0x6cb   :  { %447 = vrot.lane.b32.xlu0 %v443_v44, %s1748_s0 }
 0x6cc   :  { %449 = vrot.lane.b32.xlu1 %v444_v45, %s1748_s0 }
 0x73d   :  { %v448_v50 = vpop.permute.xlu0 %447 }
 0x73e   :  { %v450_v51 = vpop.permute.xlu1 %449  ;;  %v1926_v52 = vadd.f32 %v448_v50, %v433_v48 }
 0x73f   :  { %v1928_v53 = vadd.f32 %v450_v51, %v434_v49 }
 0x740   :  { %1601 = vtanh.f32 %v1926_v52  ;;  %v569_v24 = vrot.slane %v1926_v52, 7 }
 0x741   :  { %1603 = vtanh.f32 %v1928_v53  ;;  %v570_v25 = vrot.slane %v1928_v53, 7 }
 0x74d   :  { %v1602_v54 = vpop.eup %1601 }
 0x74e   :  { %v1604_v55 = vpop.eup %1603  ;;  %459 = vrot.lane.b32.xlu0 %v1602_v54, %s1748_s0 }
 0x74f   :  { %461 = vrot.lane.b32.xlu1 %v1604_v55, %s1748_s0 }
 0x7c0   :  { %v460_v56 = vpop.permute.xlu0 %459 }
 0x7c1   :  { %v462_v57 = vpop.permute.xlu1 %461  ;;  %v465_v58 = vmul.f32 %v1598_v38, %v460_v56 }
 0x7c2   :  { %v466_v60 = vmul.f32 %v1600_v41, %v462_v57 }
 0x7c3   :  { %v469_v62 = vrot.slane %v465_v58, 2  ;;  %v1938_v63 = vsel %vm1170_vm4, %v1168_v59, %v465_v58 }
 0x7c4   :  { %v470_v0 = vrot.slane %v466_v60, 1  ;;  %v1940_v1 = vsel %vm1170_vm4, %v1169_v61, %v466_v60 }
 0x7c6   :  { %v471_v2 = vsel %vm192_vm2, %v470_v0, %v469_v62 }
 0x7c7   :  { %472 = vrot.lane.b32.xlu0 %v471_v2, %s1751_s2 }
 0x839   :  { %v473_v3 = vpop.permute.xlu0 %472 }
 0x83a   :  { %1487 = vmatmul.mubr.msk.f32.vlgmr.msra.gmra.mxu1 %vm55_vm0, %v473_v3 }
 0x83b   :  { %1501 = vmatpush3.msra.mxu1 %v1840_v31  ;;  %1508 = vmatprep.mubr.msk.f32.mxu1 %vm1750_vm1, %v1749_v32 }
 0x83c   :  { %1502 = vmatprep.subr.mxu1 %v1749_v32 }
 0x83d   :  { %1503 = vmatpush3.msra.mxu1 %v1843_v33 }
 0x83e   :  { %1504 = vmatprep.subr.mxu1 %v1749_v32 }
 0x83f   :  { %1505 = vmatpush3.msra.mxu1 %v1850_v34 }
 0x840   :  { %1506 = vmatprep.subr.mxu1 %v1749_v32 }
 0x841   :  { %1507 = vmatpush3.msra.mxu1 %v1856_v36 }
 0x842   :  { %1522 = vmatprep.subr.mxu1 %v1749_v32 }
 0x8fa   :  { %v542_v39 = vpop.f32.mrf.mxu1 }
 0x8fb   :  { %v547_v42 = vrot.slane %v542_v39, 5  ;;  %v548_v4 = vrot.slane %v542_v39, 6 }
 0x8fc   :  { %v1488_v5 = vpop.f32.mrf.mxu1 }
 0x8fd   :  { %v551_v6 = vadd.f32 %v547_v42, %v1824_v10  ;;  %v552_v7 = vadd.f32 %v548_v4, %v1822_v8 }
 0x8ff   :  { %1605 = vtanh.f32 %v551_v6  ;;  %v1380_v12 = vmul.f32 -1.442695, %v551_v6  ;;  %v1381_v13 = vmul.f32 -1.442695, %v552_v7 }
 0x900   :  { %1607 = vtanh.f32 %v552_v7 }
 0x901   :  { %1609 = vpow2.f32 %v1380_v12 }
 0x902   :  { %1611 = vpow2.f32 %v1381_v13 }
 0x90c   :  { %v1606_v9 = vpop.eup %1605 }
 0x90d   :  { %v1608_v11 = vpop.eup %1607  ;;  %577 = vrot.lane.b32.xlu1 %v1606_v9, %s1748_s0 }
 0x90e   :  { %579 = vrot.lane.b32.xlu0 %v1608_v11, %s1748_s0  ;;  %v1610_v14 = vpop.eup %1609 }
 0x90f   :  { %v1612_v15 = vpop.eup %1611  ;;  %v559_v16 = vadd.f32 1.0, %v1610_v14 }
 0x910   :  { %v560_v17 = vadd.f32 1.0, %v1612_v15 }
 0x911   :  { %1613 = vrcp.f32 %v559_v16 }
 0x912   :  { %1615 = vrcp.f32 %v560_v17 }
 0x91e   :  { %v1614_v18 = vpop.eup %1613 }
 0x91f   :  { %v1616_v20 = vpop.eup %1615  ;;  %v573_v26 = vmul.f32 %v1614_v18, %v569_v24 }
 0x920   :  { %v574_v27 = vmul.f32 %v1616_v20, %v570_v25 }
 0x97f   :  { %v578_v19 = vpop.permute.xlu1 %577 }
 0x980   :  { %v580_v21 = vpop.permute.xlu0 %579  ;;  %v583_v22 = vmul.f32 %v1614_v18, %v578_v19 }
 0x981   :  { %v584_v23 = vmul.f32 %v1616_v20, %v580_v21 }
 0x982   :  { %587 = vrot.lane.b32.xlu1 %v583_v22, %s1748_s0 }
 0x983   :  { %589 = vrot.lane.b32.xlu0 %v584_v23, %s1748_s0 }
 0x9f4   :  { %v588_v28 = vpop.permute.xlu1 %587 }
 0x9f5   :  { %v590_v29 = vpop.permute.xlu0 %589  ;;  %v593_v30 = vadd.f32 %v588_v28, %v573_v26 }
 0x9f6   :  { %v594_v35 = vadd.f32 %v590_v29, %v574_v27 }
 0x9f7   :  { %1617 = vtanh.f32 %v593_v30  ;;  %v709_v5 = vrot.slane %v593_v30, 7 }
 0x9f8   :  { %1619 = vtanh.f32 %v594_v35  ;;  %v710_v6 = vrot.slane %v594_v35, 7 }
 0xa04   :  { %v1618_v37 = vpop.eup %1617 }
 0xa05   :  { %v1620_v38 = vpop.eup %1619  ;;  %599 = vrot.lane.b32.xlu1 %v1618_v37, %s1748_s0 }
 0xa06   :  { %601 = vrot.lane.b32.xlu0 %v1620_v38, %s1748_s0 }
 0xa77   :  { %v600_v40 = vpop.permute.xlu1 %599 }
 0xa78   :  { %v602_v41 = vpop.permute.xlu0 %601  ;;  %v605_v43 = vmul.f32 %v1614_v18, %v600_v40 }
 0xa79   :  { %v606_v44 = vmul.f32 %v1616_v20, %v602_v41 }
 0xa7a   :  { %v609_v45 = vrot.slane %v605_v43, 3  ;;  %v1966_v46 = vsel %vm1173_vm5, %v1938_v63, %v605_v43 }
 0xa7b   :  { %v610_v47 = vrot.slane %v606_v44, 2  ;;  %v1969_v48 = vsel %vm1173_vm5, %v1940_v1, %v606_v44 }
 0xa7d   :  { %v611_v49 = vsel %vm192_vm2, %v610_v47, %v609_v45 }
 0xa7e   :  { %612 = vrot.lane.b32.xlu1 %v611_v49, %s1751_s2 }
 0xaf0   :  { %v613_v50 = vpop.permute.xlu1 %612 }
 0xaf1   :  { %1498 = vmatmul.mubr.msk.f32.vlgmr.msra.gmra.mxu0 %vm55_vm0, %v613_v50 }
 0xaf2   :  { %1512 = vmatpush3.msra.mxu0 %v1840_v31  ;;  %1519 = vmatprep.mubr.msk.f32.mxu0 %vm1750_vm1, %v1749_v32 }
 0xaf3   :  { %1513 = vmatprep.subr.mxu0 %v1749_v32 }
 0xaf4   :  { %1514 = vmatpush3.msra.mxu0 %v1843_v33 }
 0xaf5   :  { %1515 = vmatprep.subr.mxu0 %v1749_v32 }
 0xaf6   :  { %1516 = vmatpush3.msra.mxu0 %v1850_v34 }
 0xaf7   :  { %1517 = vmatprep.subr.mxu0 %v1749_v32 }
 0xaf8   :  { %1518 = vmatpush3.msra.mxu0 %v1856_v36 }
 0xbb1   :  { %v682_v51 = vpop.f32.mrf.mxu0 }
 0xbb2   :  { %v687_v52 = vrot.slane %v682_v51, 4  ;;  %v688_v53 = vrot.slane %v682_v51, 5 }
 0xbb3   :  { %v1499_v54 = vpop.f32.mrf.mxu0 }
 0xbb4   :  { %v691_v55 = vadd.f32 %v687_v52, %v1824_v10  ;;  %v692_v56 = vadd.f32 %v688_v53, %v1822_v8 }
 0xbb6   :  { %1621 = vtanh.f32 %v691_v55  ;;  %v1383_v59 = vmul.f32 -1.442695, %v691_v55  ;;  %v1384_v60 = vmul.f32 -1.442695, %v692_v56 }
 0xbb7   :  { %1623 = vtanh.f32 %v692_v56 }
 0xbb8   :  { %1625 = vpow2.f32 %v1383_v59 }
 0xbb9   :  { %1627 = vpow2.f32 %v1384_v60 }
 0xbc3   :  { %v1622_v57 = vpop.eup %1621 }
 0xbc4   :  { %v1624_v58 = vpop.eup %1623  ;;  %717 = vrot.lane.b32.xlu0 %v1622_v57, %s1748_s0 }
 0xbc5   :  { %719 = vrot.lane.b32.xlu1 %v1624_v58, %s1748_s0  ;;  %v1626_v61 = vpop.eup %1625 }
 0xbc6   :  { %v1628_v62 = vpop.eup %1627  ;;  %v699_v63 = vadd.f32 1.0, %v1626_v61 }
 0xbc7   :  { %v700_v0 = vadd.f32 1.0, %v1628_v62 }
 0xbc8   :  { %1629 = vrcp.f32 %v699_v63 }
 0xbc9   :  { %1631 = vrcp.f32 %v700_v0 }
 0xbd5   :  { %v1630_v1 = vpop.eup %1629 }
 0xbd6   :  { %v1632_v3 = vpop.eup %1631  ;;  %v713_v7 = vmul.f32 %v1630_v1, %v709_v5 }
 0xbd7   :  { %v714_v9 = vmul.f32 %v1632_v3, %v710_v6 }
 0xc36   :  { %v718_v2 = vpop.permute.xlu0 %717 }
 0xc37   :  { %v720_v39 = vpop.permute.xlu1 %719  ;;  %v723_v42 = vmul.f32 %v1630_v1, %v718_v2 }
 0xc38   :  { %v724_v4 = vmul.f32 %v1632_v3, %v720_v39 }
 0xc39   :  { %727 = vrot.lane.b32.xlu0 %v723_v42, %s1748_s0 }
 0xc3a   :  { %729 = vrot.lane.b32.xlu1 %v724_v4, %s1748_s0 }
 0xcab   :  { %v728_v11 = vpop.permute.xlu0 %727 }
 0xcac   :  { %v730_v12 = vpop.permute.xlu1 %729  ;;  %v733_v13 = vadd.f32 %v728_v11, %v713_v7 }
 0xcad   :  { %v734_v14 = vadd.f32 %v730_v12, %v714_v9 }
 0xcae   :  { %1633 = vtanh.f32 %v733_v13  ;;  %v849_v49 = vrot.slane %v733_v13, 7 }
 0xcaf   :  { %1635 = vtanh.f32 %v734_v14  ;;  %v850_v50 = vrot.slane %v734_v14, 7 }
 0xcbb   :  { %v1634_v15 = vpop.eup %1633 }
 0xcbc   :  { %v1636_v16 = vpop.eup %1635  ;;  %739 = vrot.lane.b32.xlu0 %v1634_v15, %s1748_s0 }
 0xcbd   :  { %741 = vrot.lane.b32.xlu1 %v1636_v16, %s1748_s0 }
 0xd2e   :  { %v740_v17 = vpop.permute.xlu0 %739 }
 0xd2f   :  { %v742_v18 = vpop.permute.xlu1 %741  ;;  %v745_v19 = vmul.f32 %v1630_v1, %v740_v17 }
 0xd30   :  { %v746_v20 = vmul.f32 %v1632_v3, %v742_v18 }
 0xd31   :  { %v749_v21 = vrot.slane %v745_v19, 4  ;;  %v1992_v22 = vsel %vm1176_vm6, %v1966_v46, %v745_v19 }
 0xd32   :  { %v750_v23 = vrot.slane %v746_v20, 3  ;;  %v1995_v24 = vsel %vm1176_vm6, %v1969_v48, %v746_v20 }
 0xd34   :  { %v751_v25 = vsel %vm192_vm2, %v750_v23, %v749_v21 }
 0xd35   :  { %752 = vrot.lane.b32.xlu0 %v751_v25, %s1751_s2 }
 0xda7   :  { %v753_v26 = vpop.permute.xlu0 %752 }
 0xda8   :  { %1509 = vmatmul.mubr.msk.f32.vlgmr.msra.gmra.mxu1 %vm55_vm0, %v753_v26 }
 0xda9   :  { %1523 = vmatpush3.msra.mxu1 %v1840_v31  ;;  %1530 = vmatprep.mubr.msk.f32.mxu1 %vm1750_vm1, %v1749_v32 }
 0xdaa   :  { %1524 = vmatprep.subr.mxu1 %v1749_v32 }
 0xdab   :  { %1525 = vmatpush3.msra.mxu1 %v1843_v33 }
 0xdac   :  { %1526 = vmatprep.subr.mxu1 %v1749_v32 }
 0xdad   :  { %1527 = vmatpush3.msra.mxu1 %v1850_v34 }
 0xdae   :  { %1528 = vmatprep.subr.mxu1 %v1749_v32 }
 0xdaf   :  { %1529 = vmatpush3.msra.mxu1 %v1856_v36 }
 0xe68   :  { %v822_v27 = vpop.f32.mrf.mxu1 }
 0xe69   :  { %v827_v28 = vrot.slane %v822_v27, 3  ;;  %v828_v29 = vrot.slane %v822_v27, 4 }
 0xe6a   :  { %v1510_v30 = vpop.f32.mrf.mxu1 }
 0xe6b   :  { %v831_v31 = vadd.f32 %v827_v28, %v1824_v10  ;;  %v832_v35 = vadd.f32 %v828_v29, %v1822_v8 }
 0xe6d   :  { %1637 = vtanh.f32 %v831_v31  ;;  %v1386_v34 = vmul.f32 -1.442695, %v831_v31  ;;  %v1387_v32 = vmul.f32 -1.442695, %v832_v35 }
 0xe6e   :  { %1639 = vtanh.f32 %v832_v35 }
 0xe6f   :  { %1641 = vpow2.f32 %v1386_v34 }
 0xe70   :  { %1643 = vpow2.f32 %v1387_v32 }
 0xe7a   :  { %v1638_v37 = vpop.eup %1637 }
 0xe7b   :  { %v1640_v33 = vpop.eup %1639  ;;  %857 = vrot.lane.b32.xlu1 %v1638_v37, %s1748_s0 }
 0xe7c   :  { %859 = vrot.lane.b32.xlu0 %v1640_v33, %s1748_s0  ;;  %v1642_v36 = vpop.eup %1641 }
 0xe7d   :  { %v1644_v38 = vpop.eup %1643  ;;  %v839_v40 = vadd.f32 1.0, %v1642_v36 }
 0xe7e   :  { %v840_v41 = vadd.f32 1.0, %v1644_v38 }
 0xe7f   :  { %1645 = vrcp.f32 %v839_v40 }
 0xe80   :  { %1647 = vrcp.f32 %v840_v41 }
 0xe8c   :  { %v1646_v43 = vpop.eup %1645 }
 0xe8d   :  { %v1648_v45 = vpop.eup %1647  ;;  %v853_v51 = vmul.f32 %v1646_v43, %v849_v49 }
 0xe8e   :  { %v854_v52 = vmul.f32 %v1648_v45, %v850_v50 }
 0xeed   :  { %v858_v44 = vpop.permute.xlu1 %857 }
 0xeee   :  { %v860_v46 = vpop.permute.xlu0 %859  ;;  %v863_v47 = vmul.f32 %v1646_v43, %v858_v44 }
 0xeef   :  { %v864_v48 = vmul.f32 %v1648_v45, %v860_v46 }
 0xef0   :  { %867 = vrot.lane.b32.xlu1 %v863_v47, %s1748_s0 }
 0xef1   :  { %869 = vrot.lane.b32.xlu0 %v864_v48, %s1748_s0 }
 0xf62   :  { %v868_v53 = vpop.permute.xlu1 %867 }
 0xf63   :  { %v870_v54 = vpop.permute.xlu0 %869  ;;  %v873_v55 = vadd.f32 %v868_v53, %v853_v51 }
 0xf64   :  { %v874_v56 = vadd.f32 %v870_v54, %v854_v52 }
 0xf65   :  { %1649 = vtanh.f32 %v873_v55  ;;  %v989_v25 = vrot.slane %v873_v55, 7 }
 0xf66   :  { %1651 = vtanh.f32 %v874_v56  ;;  %v990_v26 = vrot.slane %v874_v56, 7 }
 0xf72   :  { %v1650_v57 = vpop.eup %1649 }
 0xf73   :  { %v1652_v58 = vpop.eup %1651  ;;  %879 = vrot.lane.b32.xlu1 %v1650_v57, %s1748_s0 }
 0xf74   :  { %881 = vrot.lane.b32.xlu0 %v1652_v58, %s1748_s0 }
 0xfe5   :  { %v880_v59 = vpop.permute.xlu1 %879 }
 0xfe6   :  { %v882_v60 = vpop.permute.xlu0 %881  ;;  %v885_v61 = vmul.f32 %v1646_v43, %v880_v59 }
 0xfe7   :  { %v886_v62 = vmul.f32 %v1648_v45, %v882_v60 }
 0xfe8   :  { %v889_v63 = vrot.slane %v885_v61, 5  ;;  %v1180_v0 = vsel %vm1179_vm7, %v1992_v22, %v885_v61 }
 0xfe9   :  { %v890_v1 = vrot.slane %v886_v62, 4  ;;  %v1181_v2 = vsel %vm1179_vm7, %v1995_v24, %v886_v62 }
 0xfeb   :  { %v891_v3 = vsel %vm192_vm2, %v890_v1, %v889_v63 }
 0xfec   :  { %892 = vrot.lane.b32.xlu1 %v891_v3, %s1751_s2 }
0x105e   :  { %v893_v39 = vpop.permute.xlu1 %892 }
0x105f   :  { %1520 = vmatmul.mubr.msk.f32.vlgmr.msra.gmra.mxu0 %vm55_vm0, %v893_v39 }
0x111f   :  { %v962_v42 = vpop.f32.mrf.mxu0 }
0x1120   :  { %v967_v4 = vrot.slane %v962_v42, 2  ;;  %v968_v5 = vrot.slane %v962_v42, 3 }
0x1121   :  { %v1521_v6 = vpop.f32.mrf.mxu0 }
0x1122   :  { %v971_v7 = vadd.f32 %v967_v4, %v1824_v10  ;;  %v972_v9 = vadd.f32 %v968_v5, %v1822_v8 }
0x1124   :  { %1653 = vtanh.f32 %v971_v7  ;;  %v1389_v13 = vmul.f32 -1.442695, %v971_v7  ;;  %v1390_v14 = vmul.f32 -1.442695, %v972_v9  ;;  %v1191_v7 = vld [vmem:[%s2081_s5 + $0x18] sm:$0xff] }
0x1125   :  { %1655 = vtanh.f32 %v972_v9  ;;  %v1190_v9 = vld [vmem:[%s2081_s5 + $0x10] sm:$0xff]  ;;  %1533 = vmatprep.subr.mxu0 %v1191_v7 }
0x1126   :  { %1657 = vpow2.f32 %v1389_v13  ;;  %1534 = vmatpush3.msra.mxu0 %v1191_v7  ;;  %v1188_v13 = vld [vmem:[%s2081_s5] sm:$0xff] }
0x1127   :  { %1659 = vpow2.f32 %v1390_v14  ;;  %1535 = vmatprep.subr.mxu0 %v1190_v9 }
0x1128   :  { %1536 = vmatpush3.msra.mxu0 %v1190_v9 }
0x1131   :  { %v1654_v11 = vpop.eup %1653 }
0x1132   :  { %v1656_v12 = vpop.eup %1655  ;;  %997 = vrot.lane.b32.xlu0 %v1654_v11, %s1748_s0  ;;  %v1189_v11 = vld [vmem:[%s2081_s5 + $0x8] sm:$0xff]  ;;  %s1753_s5 = smov 127  }
0x1133   :  { %999 = vrot.lane.b32.xlu1 %v1656_v12, %s1748_s0  ;;  %v1658_v15 = vpop.eup %1657  ;;  %1537 = vmatprep.subr.mxu0 %v1189_v11 }
0x1134   :  { %v1660_v16 = vpop.eup %1659  ;;  %v979_v17 = vadd.f32 1.0, %v1658_v15  ;;  %1538 = vmatpush3.msra.mxu0 %v1189_v11  ;;  %v1277_v15 = vld [vmem:[%s2077_s1] sm:$0xff] }
0x1135   :  { %v980_v18 = vadd.f32 1.0, %v1660_v16  ;;  %1539 = vmatprep.subr.mxu0 %v1188_v13  ;;  %v1278_v16 = vld [vmem:[%s2077_s1 + $0x8] sm:$0xff]  ;;  %s1752_s1 = smov 1  }
0x1136   :  { %1661 = vrcp.f32 %v979_v17  ;;  %1540 = vmatpush3.msra.mxu0 %v1188_v13  ;;  %v1279_v17 = vadd.f32 1e-09, %v1277_v15 }
0x1137   :  { %1663 = vrcp.f32 %v980_v18  ;;  %v1280_v18 = vadd.f32 1e-09, %v1278_v16 }
0x1143   :  { %v1662_v19 = vpop.eup %1661 }
0x1144   :  { %v1664_v21 = vpop.eup %1663  ;;  %v993_v27 = vmul.f32 %v1662_v19, %v989_v25 }
0x1145   :  { %v994_v28 = vmul.f32 %v1664_v21, %v990_v26 }
0x11a4   :  { %v998_v20 = vpop.permute.xlu0 %997 }
0x11a5   :  { %v1000_v22 = vpop.permute.xlu1 %999  ;;  %v1003_v23 = vmul.f32 %v1662_v19, %v998_v20 }
0x11a6   :  { %v1004_v24 = vmul.f32 %v1664_v21, %v1000_v22 }
0x11a7   :  { %1007 = vrot.lane.b32.xlu0 %v1003_v23, %s1748_s0 }
0x11a8   :  { %1009 = vrot.lane.b32.xlu1 %v1004_v24, %s1748_s0 }
0x1219   :  { %v1008_v29 = vpop.permute.xlu0 %1007 }
0x121a   :  { %v1010_v30 = vpop.permute.xlu1 %1009  ;;  %v1013_v31 = vadd.f32 %v1008_v29, %v993_v27 }
0x121b   :  { %v1014_v35 = vadd.f32 %v1010_v30, %v994_v28 }
0x121c   :  { %1665 = vtanh.f32 %v1013_v31  ;;  %v1129_v1 = vrot.slane %v1013_v31, 7 }
0x121d   :  { %1667 = vtanh.f32 %v1014_v35 }
0x1229   :  { %v1666_v37 = vpop.eup %1665 }
0x122a   :  { %v1668_v33 = vpop.eup %1667  ;;  %1019 = vrot.lane.b32.xlu0 %v1666_v37, %s1748_s0 }
0x122b   :  { %1021 = vrot.lane.b32.xlu1 %v1668_v33, %s1748_s0 }
0x129c   :  { %v1020_v34 = vpop.permute.xlu0 %1019 }
0x129d   :  { %v1022_v32 = vpop.permute.xlu1 %1021  ;;  %v1025_v36 = vmul.f32 %v1662_v19, %v1020_v34 }
0x129e   :  { %v1026_v38 = vmul.f32 %v1664_v21, %v1022_v32 }
0x129f   :  { %v1029_v40 = vrot.slane %v1025_v36, 6  ;;  %v2030_v41 = vsel %vm1182_vm8, %v1180_v0, %v1025_v36 }
0x12a0   :  { %v1030_v43 = vrot.slane %v1026_v38, 5  ;;  %v2032_v44 = vsel %vm1182_vm8, %v1181_v2, %v1026_v38  ;;  %v1130_v2 = vrot.slane %v1014_v35, 7 }
0x12a2   :  { %v1031_v45 = vsel %vm192_vm2, %v1030_v43, %v1029_v40 }
0x12a3   :  { %1032 = vrot.lane.b32.xlu0 %v1031_v45, %s1751_s2 }
0x1315   :  { %v1033_v46 = vpop.permute.xlu0 %1032 }
0x1316   :  { %1531 = vmatmul.mubr.msk.f32.vlgmr.msra.gmra.mxu1 %vm55_vm0, %v1033_v46 }
0x13d6   :  { %v1102_v47 = vpop.f32.mrf.mxu1 }
0x13d7   :  { %v1107_v48 = vrot.slane %v1102_v47, 1  ;;  %v1108_v49 = vrot.slane %v1102_v47, 2 }
0x13d8   :  { %v1532_v50 = vpop.f32.mrf.mxu1 }
0x13d9   :  { %v1111_v51 = vadd.f32 %v1107_v48, %v1824_v10  ;;  %v1112_v52 = vadd.f32 %v1108_v49, %v1822_v8  ;;  %v1306_v48 = vstv %s2082_s6  ;;  %s1755_s6 = smov [#allocation6]  }
0x13da   :  { %s1359_s11 = sshll.u32 %s1755_s6, 4  ;;  %s1360_s11 = int_to_ptr.vmem [resolvable:$true] %s1359_s11 }
0x13db   :  { %1669 = vtanh.f32 %v1111_v51  ;;  %v1392_v55 = vmul.f32 -1.442695, %v1111_v51  ;;  %v1393_v56 = vmul.f32 -1.442695, %v1112_v52  ;;  %s1721_s12 = scalar_lea.vmem %s1360_s11, 32  ;;  %p1726_p6 = scmp.lt.s32.totalorder %s1360_s11, %s1360_s11 }
0x13dc   :  { %1671 = vtanh.f32 %v1112_v52  ;;  %p1722_p5 = scmp.ne.s32.totalorder %s1360_s11, %s1721_s12  ;;  %p1727_p7 = scmp.lt.s32.totalorder %s1721_s12, %s1721_s12 }
0x13dd   :  { %1673 = vpow2.f32 %v1392_v55 }
0x13de   :  { %1675 = vpow2.f32 %v1393_v56  ;;  %p1728_p8 = por %p1727_p7, %p1726_p6 }
0x13e0   :  { %p1729_p9 = pnand %p1728_p8, %p1722_p5 }
0x13e8   :  { %v1670_v53 = vpop.eup %1669 }
0x13e9   :  { %v1672_v54 = vpop.eup %1671  ;;  %1137 = vrot.lane.b32.xlu1 %v1670_v53, %s1748_s0 }
0x13ea   :  { %1139 = vrot.lane.b32.xlu0 %v1672_v54, %s1748_s0  ;;  %v1674_v57 = vpop.eup %1673 }
0x13eb   :  { %v1676_v58 = vpop.eup %1675  ;;  %v1119_v59 = vadd.f32 1.0, %v1674_v57 }
0x13ec   :  { %v1120_v60 = vadd.f32 1.0, %v1676_v58 }
0x13ed   :  { %1677 = vrcp.f32 %v1119_v59 }
0x13ee   :  { %1679 = vrcp.f32 %v1120_v60 }
0x13fa   :  { %v1678_v10 = vpop.eup %1677 }
0x13fb   :  { %v1680_v61 = vpop.eup %1679  ;;  %v1133_v3 = vmul.f32 %v1678_v10, %v1129_v1 }
0x13fc   :  { %v1134_v39 = vmul.f32 %v1680_v61, %v1130_v2 }
0x145b   :  { %v1138_v8 = vpop.permute.xlu1 %1137 }
0x145c   :  { %v1140_v62 = vpop.permute.xlu0 %1139  ;;  %v1143_v63 = vmul.f32 %v1678_v10, %v1138_v8 }
0x145d   :  { %v1144_v0 = vmul.f32 %v1680_v61, %v1140_v62 }
0x145e   :  { %1147 = vrot.lane.b32.xlu1 %v1143_v63, %s1748_s0  ;;  %v1339_v63 = vlaneseq }
0x145f   :  { %1149 = vrot.lane.b32.xlu0 %v1144_v0, %s1748_s0 }
0x1460   :  { %v1340_v0 = vand.u32 127, %v1339_v63  ;;  %v1342_v1 = vshrl.u32 %v1339_v63, 7 }
0x1462   :  { %v1343_v2 = vsub.s32 %v1340_v0, %v1342_v1 }
0x14d0   :  { %v1148_v42 = vpop.permute.xlu1 %1147 }
0x14d1   :  { %v1150_v4 = vpop.permute.xlu0 %1149  ;;  %v1153_v5 = vadd.f32 %v1148_v42, %v1133_v3 }
0x14d2   :  { %v1154_v6 = vadd.f32 %v1150_v4, %v1134_v39 }
0x14d3   :  { %1681 = vtanh.f32 %v1153_v5 }
0x14d4   :  { %1683 = vtanh.f32 %v1154_v6 }
0x14d5   :  { %1685 = vlog2.f32 %v1279_v17 }
0x14d6   :  { %1687 = vlog2.f32 %v1280_v18 }
0x14e0   :  { %v1682_v12 = vpop.eup %1681 }
0x14e1   :  { %v1684_v14 = vpop.eup %1683  ;;  %1159 = vrot.lane.b32.xlu1 %v1682_v12, %s1748_s0 }
0x14e2   :  { %1161 = vrot.lane.b32.xlu0 %v1684_v14, %s1748_s0  ;;  %v1686_v19 = vpop.eup %1685 }
0x14e3   :  { %v1688_v20 = vpop.eup %1687  ;;  %v1282_v21 = vmul.f32 0.6931472, %v1686_v19 }
0x14e4   :  { %v1284_v22 = vmul.f32 0.6931472, %v1688_v20 }
0x14e5   :  { %v1285_v23 = vsub.f32 0.0, %v1282_v21 }
0x14e6   :  { %v1286_v24 = vsub.f32 0.0, %v1284_v22 }
0x14e7   :  { %v1287_v25 = vadd.f32 1e-09, %v1285_v23 }
0x14e8   :  { %v1288_v26 = vadd.f32 1e-09, %v1286_v24 }
0x14e9   :  { %1689 = vlog2.f32 %v1287_v25 }
0x14ea   :  { %1691 = vlog2.f32 %v1288_v26 }
0x14f6   :  { %v1690_v27 = vpop.eup %1689 }
0x14f7   :  { %v1692_v28 = vpop.eup %1691  ;;  %v1290_v30 = vmul.f32 0.6931472, %v1690_v27 }
0x14f8   :  { %v1292_v37 = vmul.f32 0.6931472, %v1692_v28 }
0x14f9   :  { %v1293_v36 = vsub.f32 0.0, %v1290_v30 }
0x14fa   :  { %v1294_v38 = vsub.f32 0.0, %v1292_v37 }
0x1553   :  { %v1160_v29 = vpop.permute.xlu1 %1159 }
0x1554   :  { %v1162_v31 = vpop.permute.xlu0 %1161  ;;  %v1165_v35 = vmul.f32 %v1678_v10, %v1160_v29 }
0x1555   :  { %v1166_v33 = vmul.f32 %v1680_v61, %v1162_v31 }
0x1556   :  { %v1186_v34 = vsel %vm1185_vm9, %v2030_v41, %v1165_v35 }
0x1557   :  { %v1187_v32 = vsel %vm1185_vm9, %v2032_v44, %v1166_v33  ;;  %1194 = vrot.lane.b32.xlu1 %v1186_v34, %s1751_s2  ;;  %v1754_v44 = vmov 0  }
0x1558   :  { %1196 = vrot.lane.b32.xlu0 %v1187_v32, %s1751_s2  ;;  %1555 = vset.pattern.permute.xlu1 %v1754_v44 }
0x1559   :  { %1556 = vset.pattern.permute.xlu0 %v1754_v44 }
0x155b   :  { %1297 = vrot.lane.b32.xlu1 %v1293_v36, %s1752_s1 }
0x155c   :  { %1299 = vrot.lane.b32.xlu0 %v1294_v38, %s1752_s1 }
0x15c9   :  { %v1195_v40 = vpop.permute.xlu1 %1194 }
0x15ca   :  { %v1197_v43 = vpop.permute.xlu0 %1196  ;;  %1541 = vmatprep.mubr.msk.f32.mxu0 %vm55_vm0, %v1195_v40 }
0x15cb   :  { %1542 = vmatmul.mubr.msk.f32.vlgmr.msra.gmra.mxu0 %vm55_vm0, %v1197_v43 }
0x15cd   :  { %v1298_v45 = vpop.permute.xlu1 %1297 }
0x15ce   :  { %v1300_v46 = vpop.permute.xlu0 %1299  ;;  %v1303_v41 = vsub.f32 %v1293_v36, %v1298_v45 }
0x15cf   :  { %v1304_v47 = vsub.f32 %v1294_v38, %v1300_v46 }
0x15d0   :  { %1311 = vrot.lane.b32.xlu1 %v1303_v41, %s1753_s5 }
0x15d1   :  { %1313 = vrot.lane.b32.xlu0 %v1304_v47, %s1753_s5 }
0x1642   :  { %v1312_v53 = vpop.permute.xlu1 %1311 }
0x1643   :  { %v1314_v50 = vpop.permute.xlu0 %1313 }
0x168b   :  { %v1543_v49 = vpop.f32.mrf.mxu0 }
0x168c   :  { %v1308_v51 = vadd.f32 %v1543_v49, %v1306_v48 }
0x168d   :  { %v1268_v52 = vpop.f32.mrf.mxu0 }
0x168e   :  { %v1318_v54 = vadd.f32 %v1314_v50, %v1308_v51  ;;  %v1307_v55 = vadd.f32 %v1306_v48, %v1268_v52 }
0x1690   :  { %v1397_v56 = vmul.f32 -1.442695, %v1318_v54  ;;  %v1317_v57 = vadd.f32 %v1312_v53, %v1307_v55 }
0x1692   :  { %1693 = vpow2.f32 %v1397_v56  ;;  %v1396_v58 = vmul.f32 -1.442695, %v1317_v57 }
0x1694   :  { %1695 = vpow2.f32 %v1396_v58 }
0x169f   :  { %v1694_v59 = vpop.eup %1693 }
0x16a0   :  { %v1326_v60 = vadd.f32 1.0, %v1694_v59 }
0x16a1   :  { %v1696_v10 = vpop.eup %1695 }
0x16a2   :  { %1697 = vrcp.f32 %v1326_v60  ;;  %v1325_v8 = vadd.f32 1.0, %v1696_v10 }
0x16a4   :  { %1699 = vrcp.f32 %v1325_v8 }
0x16af   :  { %v1698_v61 = vpop.eup %1697 }
0x16b0   :  { %1337 = vperm.xlu0 %1556, %v1698_v61  }
0x16b1   :  { %v1700_v62 = vpop.eup %1699 }
0x16b2   :  { %1334 = vperm.xlu1 %1555, %v1700_v62  }
0x172b   :  { %v1338_v3 = vpop.permute.xlu0 %1337 }
0x172c   :  { %v1348_v42 = vrot.slane %v1338_v3, %v1343_v2 }
0x172d   :  { %v1335_v39 = vpop.permute.xlu1 %1334 }
0x172e   :  { %v1344_v4 = vrot.slane %v1335_v39, %v1343_v2 }
0x1730   :  { %v1349_v5 = vsel %vm192_vm2, %v1348_v42, %v1344_v4 }
0x1731   :  { %1352 = vst.msk [vmem:[#allocation6] sm:$0x3] %vm1351_vm10, %v1349_v5 }
0x1732   :  { %1732 = shalt.err (!%p1729_p9)
}
0x1733   :  { %1362 = dma.vmem_to_hbm [thread:$0]  %s1360_s11, 32, %s2083_s7, [#allocation5]  }
0x1734   :  { %1743 = dma.done.wait [#allocation5], 32  }
0x1735   :  { %1744 = vsyncadd [#allocation5], 4294967264 }
0x1736   :  { %1366 = vsyncpa [#allocation4], 1 }
0x1737   :  { %1367 = vsyncpa [#allocation5], 1 }

</bundles_post_ra>
